<compile_context>
chip_gen: v7x
topology: tpu7x:2x2x1
jax: 0.10.0
libtpu: 0.0.40
codegen_flags: <defaults>
</compile_context>

<pallas_src>
import jax
import jax.numpy as jnp
from jax.experimental import pallas as pl
from jax.experimental.pallas import tpu as pltpu

F_PAD = 128          # padded feature width (sublanes in the transposed layout)
BL_MAX = 4096        # max batch-lane tile per grid step (multiple of 128)


def _mlp_kernel(x_ref, w_ref, vec_ref, o_ref):
    """One (1, BL) batch strip through the whole 4-layer MLP.

    Batch lives on lanes, features on sublanes: hidden slabs are (F_PAD, BL),
    so the x DMA and the output store are lane-dense, and the two real matmuls
    are healthy (128,128) x (128,BL) MXU ops.
    """
    x = x_ref[...]                       # (1, BL)      batch strip
    vec = vec_ref[...]                   # (F_PAD, 8)   column-packed vectors
    w1c = vec[:, 0:1]                    # Linear(1,10) weights (column, 0-pad)
    b1c = vec[:, 1:2]
    b2c = vec[:, 2:3]
    b3c = vec[:, 3:4]
    w4c = vec[:, 4:5]                    # Linear(10,1) weights (column, 0-pad)
    b4 = vec[0:1, 5:6]                   # Linear(10,1) bias, (1, 1)

    # layer1: Linear(1,10) + Tanh.  K == 1, so a VPU broadcast multiply *is*
    # the matmul; tanh(0)=0 keeps padded feature rows exactly zero.
    h = jnp.tanh(w1c * x + b1c)                                      # (128, BL)

    # layer2: Linear(10,20) + ReLU   (MXU, pre-transposed packed weights)
    h = jnp.maximum(
        jnp.dot(w_ref[0], h, preferred_element_type=jnp.float32) + b2c, 0.0)

    # layer3: Linear(20,10) + ReLU   (MXU)
    h = jnp.maximum(
        jnp.dot(w_ref[1], h, preferred_element_type=jnp.float32) + b3c, 0.0)

    # fc: Linear(10,1) as a cross-sublane (XLU) reduction -> lane-dense (1, BL).
    o_ref[...] = jnp.sum(h * w4c, axis=0, keepdims=True) + b4


def _round_up(a, b):
    return ((a + b - 1) // b) * b


def _choose_tiling(n):
    """Pick (n_pad, bl): pad only to the 128-lane granule, then pick the largest
    block <= BL_MAX that evenly divides it, so tile size is decoupled from the
    padding and waste is bounded by < 128 rows."""
    n128 = _round_up(max(n, 1), 128)
    m = n128 // 128
    d_max = BL_MAX // 128
    d = 1
    for cand in range(min(m, d_max), 0, -1):
        if m % cand == 0:
            d = cand
            break
    return n128, 128 * d


def pack_params(params):
    """Pad, transpose and pack the weights once, outside the jitted forward."""
    w = jnp.zeros((2, F_PAD, F_PAD), jnp.float32)
    w = w.at[0, :20, :10].set(params["w2"].T.astype(jnp.float32))   # W2^T
    w = w.at[1, :10, :20].set(params["w3"].T.astype(jnp.float32))   # W3^T

    vec = jnp.zeros((F_PAD, 8), jnp.float32)
    vec = vec.at[:10, 0].set(params["w1"][0].astype(jnp.float32))   # w1 column
    vec = vec.at[:10, 1].set(params["b1"].astype(jnp.float32))
    vec = vec.at[:20, 2].set(params["b2"].astype(jnp.float32))
    vec = vec.at[:10, 3].set(params["b3"].astype(jnp.float32))
    vec = vec.at[:10, 4].set(params["w4"][:, 0].astype(jnp.float32))
    vec = vec.at[0, 5].set(params["b4"].astype(jnp.float32).reshape(()))  # b4
    return {"w": w, "vec": vec}


@jax.jit
def virus_net_forward(x, packed):
    """x: (N, 1) float32 -> (N, 1) float32 (same semantics as virusNet.forward)."""
    n = x.shape[0]
    n_pad, bl = _choose_tiling(n)

    x_row = x.astype(jnp.float32).reshape(1, n)            # batch on lanes
    if n_pad != n:
        x_row = jnp.pad(x_row, ((0, 0), (0, n_pad - n)))

    out_row = pl.pallas_call(
        _mlp_kernel,
        out_shape=jax.ShapeDtypeStruct((1, n_pad), jnp.float32),
        grid_spec=pltpu.PrefetchScalarGridSpec(
            num_scalar_prefetch=0,
            grid=(n_pad // bl,),
            in_specs=[
                pl.BlockSpec((1, bl), lambda i: (0, i)),               # x strip
                pl.BlockSpec((2, F_PAD, F_PAD), lambda i: (0, 0, 0)),  # W2^T,W3^T
                pl.BlockSpec((F_PAD, 8), lambda i: (0, 0)),            # vec pack
            ],
            out_specs=pl.BlockSpec((1, bl), lambda i: (0, i)),
        ),
        compiler_params=pltpu.CompilerParams(
            dimension_semantics=("parallel",)),
    )(x_row, packed["w"], packed["vec"])

    return out_row[:, :n].reshape(n, 1)   # (N, 1)


def init_params(key):
    """Deterministic init mimicking PyTorch's U(-1/sqrt(fan_in), 1/sqrt(fan_in))."""
    dims = [(1, 10), (10, 20), (20, 10), (10, 1)]
    params = {}
    keys = jax.random.split(key, 2 * len(dims))
    for idx, (fin, fout) in enumerate(dims):
        bound = 1.0 / float(fin) ** 0.5
        params[f"w{idx + 1}"] = jax.random.uniform(
            keys[2 * idx], (fin, fout), jnp.float32, -bound, bound)
        params[f"b{idx + 1}"] = jax.random.uniform(
            keys[2 * idx + 1], (fout,), jnp.float32, -bound, bound)
    return params


def reference_forward(x, params):
    h = jnp.tanh(x @ params["w1"] + params["b1"])
    h = jnp.maximum(h @ params["w2"] + params["b2"], 0.0)
    h = jnp.maximum(h @ params["w3"] + params["b3"], 0.0)
    return h @ params["w4"] + params["b4"]


if __name__ == "__main__":
    key = jax.random.PRNGKey(0)
    k_param, k_x = jax.random.split(key)
    params = init_params(k_param)
    packed = pack_params(params)   # pad / transpose / pack once, outside the jit

    # small batch of scalar inputs, matching nn.Linear(1, 10)'s expected (N, 1)
    x = jax.random.uniform(k_x, (8, 1), jnp.float32, -2.0, 2.0)

    out = jax.block_until_ready(virus_net_forward(x, packed))
    ref = reference_forward(x, params)

    assert out.shape == (8, 1), out.shape
    assert jnp.allclose(out, ref, atol=1e-5, rtol=1e-5), (out, ref)

    print("KERNEL_OK")
</pallas_src>

<mosaic_0001>
module attributes {stable_mosaic.version = 11 : i64} {
  func.func @_mlp_kernel(%arg0: i32, %arg1: memref<1x128xf32, #tpu.memory_space<vmem>>, %arg2: memref<2x128x128xf32, #tpu.memory_space<vmem>>, %arg3: memref<128x8xf32, #tpu.memory_space<vmem>>, %arg4: memref<1x128xf32, #tpu.memory_space<vmem>>) attributes {dimension_semantics = [#tpu.dimension_semantics<parallel>], iteration_bounds = array<i64: 1>, scalar_prefetch = 0 : i64, scratch_operands = 0 : i64, tpu.core_type = #tpu.core_type<tc>, window_params = [{transform_indices = @transform_0, window_bounds = array<i64: 1, 128>}, {pipeline_mode = #tpu.pipeline_mode<synchronous>, transform_indices = @transform_1, window_bounds = array<i64: 2, 128, 128>}, {pipeline_mode = #tpu.pipeline_mode<synchronous>, transform_indices = @transform_2, window_bounds = array<i64: 128, 8>}, {transform_indices = @transform_3, window_bounds = array<i64: 1, 128>}]} {
    %c0 = arith.constant 0 : index
    %c0_0 = arith.constant 0 : index
    %0 = vector.load %arg1[%c0, %c0_0] : memref<1x128xf32, #tpu.memory_space<vmem>>, vector<1x128xf32>
    %c0_1 = arith.constant 0 : index
    %c0_2 = arith.constant 0 : index
    %1 = vector.load %arg3[%c0_1, %c0_2] : memref<128x8xf32, #tpu.memory_space<vmem>>, vector<128x8xf32>
    %2 = vector.extract_strided_slice %1 {offsets = [0, 0], sizes = [128, 1], strides = [1, 1]} : vector<128x8xf32> to vector<128x1xf32>
    %3 = vector.extract_strided_slice %1 {offsets = [0, 1], sizes = [128, 1], strides = [1, 1]} : vector<128x8xf32> to vector<128x1xf32>
    %4 = vector.extract_strided_slice %1 {offsets = [0, 2], sizes = [128, 1], strides = [1, 1]} : vector<128x8xf32> to vector<128x1xf32>
    %5 = vector.extract_strided_slice %1 {offsets = [0, 3], sizes = [128, 1], strides = [1, 1]} : vector<128x8xf32> to vector<128x1xf32>
    %6 = vector.extract_strided_slice %1 {offsets = [0, 4], sizes = [128, 1], strides = [1, 1]} : vector<128x8xf32> to vector<128x1xf32>
    %7 = vector.extract_strided_slice %1 {offsets = [0, 5], sizes = [1, 1], strides = [1, 1]} : vector<128x8xf32> to vector<1x1xf32>
    %8 = vector.broadcast %2 : vector<128x1xf32> to vector<128x128xf32>
    %9 = vector.broadcast %0 : vector<1x128xf32> to vector<128x128xf32>
    %10 = arith.mulf %8, %9 : vector<128x128xf32>
    %11 = vector.broadcast %3 : vector<128x1xf32> to vector<128x128xf32>
    %12 = arith.addf %10, %11 : vector<128x128xf32>
    %13 = math.tanh %12 : vector<128x128xf32>
    %c0_3 = arith.constant 0 : index
    %c0_4 = arith.constant 0 : index
    %c0_5 = arith.constant 0 : index
    %14 = vector.load %arg2[%c0_3, %c0_4, %c0_5] : memref<2x128x128xf32, #tpu.memory_space<vmem>>, vector<1x128x128xf32>
    %15 = vector.shape_cast %14 : vector<1x128x128xf32> to vector<128x128xf32>
    %cst = arith.constant dense<0.000000e+00> : vector<128x128xf32>
    %16 = tpu.matmul %15, %13, %cst {dimension_numbers = #tpu.dot_dimension_numbers<[1], [0], [0], [1], [0, 0, 1, 1], [], []>} : vector<128x128xf32>, vector<128x128xf32>, vector<128x128xf32> -> vector<128x128xf32>
    %17 = vector.broadcast %4 : vector<128x1xf32> to vector<128x128xf32>
    %18 = arith.addf %16, %17 : vector<128x128xf32>
    %cst_6 = arith.constant 0.000000e+00 : f32
    %19 = vector.broadcast %cst_6 : f32 to vector<128x128xf32>
    %20 = arith.maximumf %18, %19 : vector<128x128xf32>
    %c1 = arith.constant 1 : index
    %c0_7 = arith.constant 0 : index
    %c0_8 = arith.constant 0 : index
    %21 = vector.load %arg2[%c1, %c0_7, %c0_8] : memref<2x128x128xf32, #tpu.memory_space<vmem>>, vector<1x128x128xf32>
    %22 = vector.shape_cast %21 : vector<1x128x128xf32> to vector<128x128xf32>
    %cst_9 = arith.constant dense<0.000000e+00> : vector<128x128xf32>
    %23 = tpu.matmul %22, %20, %cst_9 {dimension_numbers = #tpu.dot_dimension_numbers<[1], [0], [0], [1], [0, 0, 1, 1], [], []>} : vector<128x128xf32>, vector<128x128xf32>, vector<128x128xf32> -> vector<128x128xf32>
    %24 = vector.broadcast %5 : vector<128x1xf32> to vector<128x128xf32>
    %25 = arith.addf %23, %24 : vector<128x128xf32>
    %cst_10 = arith.constant 0.000000e+00 : f32
    %26 = vector.broadcast %cst_10 : f32 to vector<128x128xf32>
    %27 = arith.maximumf %25, %26 : vector<128x128xf32>
    %28 = vector.broadcast %6 : vector<128x1xf32> to vector<128x128xf32>
    %29 = arith.mulf %27, %28 : vector<128x128xf32>
    %cst_11 = arith.constant dense<0.000000e+00> : vector<128xf32>
    %30 = vector.multi_reduction <add>, %29, %cst_11 [0] : vector<128x128xf32> to vector<128xf32>
    %31 = vector.shape_cast %30 : vector<128xf32> to vector<1x128xf32>
    %32 = vector.broadcast %7 : vector<1x1xf32> to vector<1x128xf32>
    %33 = arith.addf %31, %32 : vector<1x128xf32>
    %c0_12 = arith.constant 0 : index
    %c0_13 = arith.constant 0 : index
    %34 = vector.load %arg4[%c0_12, %c0_13] : memref<1x128xf32, #tpu.memory_space<vmem>>, vector<1x128xf32>
    tpu.vector_store %arg4[%c0_12, %c0_13], %33 {strides = array<i32>} : memref<1x128xf32, #tpu.memory_space<vmem>>, vector<1x128xf32>,
    return
  }
  func.func @transform_0(%arg0: i32) -> (i32, i32) {
    %c0_i32 = arith.constant 0 : i32
    %c0_i32_0 = arith.constant 0 : i32
    return %c0_i32, %arg0 : i32, i32
  }
  func.func @transform_1(%arg0: i32) -> (i32, i32, i32) {
    %c0_i32 = arith.constant 0 : i32
    %c0_i32_0 = arith.constant 0 : i32
    %c0_i32_1 = arith.constant 0 : i32
    %c0_i32_2 = arith.constant 0 : i32
    return %c0_i32, %c0_i32_0, %c0_i32_1 : i32, i32, i32
  }
  func.func @transform_2(%arg0: i32) -> (i32, i32) {
    %c0_i32 = arith.constant 0 : i32
    %c0_i32_0 = arith.constant 0 : i32
    %c0_i32_1 = arith.constant 0 : i32
    return %c0_i32, %c0_i32_0 : i32, i32
  }
  func.func @transform_3(%arg0: i32) -> (i32, i32) {
    %c0_i32 = arith.constant 0 : i32
    %c0_i32_0 = arith.constant 0 : i32
    return %c0_i32, %arg0 : i32, i32
  }
}

</mosaic_0001>

<bundles_post_ra>
// kernel: virus_net_forward.1
= control target key start
LH: loop header
LB: loop body
LE: loop exit
PB: predicated region body
PF: predicated region fallthrough
CT: control target
= control target key end

     0   :  { %8 = vsyncpa [#allocation3], 0  ;;  %s1178_s12 = smov [#allocation2]   ;;  %s1422_s0 = inlined_call_operand.vmem [shape: f32[1,128], index: 0, kind: input, shape index: {}]   ;;  %s1423_s1 = inlined_call_operand.hbm [shape: f32[2,128,128], index: 1, kind: input, shape index: {}]   ;;  %s1424_s2 = inlined_call_operand.vmem [shape: f32[128,8], index: 2, kind: input, shape index: {}]   ;;  %s1425_s3 = inlined_call_operand.vmem [shape: f32[1,128], index: 3, kind: output, shape index: {}]  }
   0x1   :  { %s16_s13 = sshll.u32 %s1178_s12, 4  ;;  %s1154_s16 = scalar_lea.hbm %s1423_s1, 4096  ;;  %s17_s13 = int_to_ptr.vmem [resolvable:$true] %s16_s13 }
   0x2   :  { %p1155_p0 = scmp.ne.s32.totalorder %s1423_s1, %s1154_s16  ;;  %p1158_p1 = scmp.lt.u32.totalorder %s1154_s16, %s1423_s1 }
   0x4   :  { %p1160_p2 = pnand %p1158_p1, %p1155_p0 }
   0x6   :  { %1163 = shalt.err (!%p1160_p2)
}
   0x7   :  { %s1164_s21 = scalar_lea.vmem %s17_s13, 4096  ;;  %p1169_p4 = scmp.lt.s32.totalorder %s17_s13, %s17_s13 }
   0x8   :  { %p1165_p3 = scmp.ne.s32.totalorder %s17_s13, %s1164_s21  ;;  %p1170_p5 = scmp.lt.s32.totalorder %s1164_s21, %s1164_s21 }
   0xa   :  { %p1171_p6 = por %p1170_p5, %p1169_p4 }
   0xc   :  { %p1172_p7 = pnand %p1171_p6, %p1165_p3 }
   0xe   :  { %1175 = shalt.err (!%p1172_p7)
}
   0xf   :  { %s1179_s22 = smov 128   ;;  %s1180_s23 = smov 8  }
  0x10   :  { %22 = dma.hbm_to_vmem [thread:$0]  %s1423_s1, 4096, %s17_s13, [#allocation3], %s1179_s22, %s1179_s22, %s1180_s23  }
  0x11   :  { %1176 = dma.done.wait [#allocation3], 4096  }
  0x12   :  { %1177 = vsyncadd [#allocation3], 4294963200  ;;  %v1181_v0 = vmov 1   ;;  %v1224_v1 = vld [vmem:[%s1424_s2 + $0x10] sm:$0xff]  ;;  %v1229_v2 = vld [vmem:[%s1424_s2] sm:$0xff]  ;;  %v1182_v7 = vmov 0  }
  0x13   :  { %1090 = vset.pattern.permute.xlu0 %v1181_v0  ;;  %1088 = vset.pattern.permute.xlu1 %v1181_v0  ;;  %v1236_v3 = vld [vmem:[%s1424_s2 + $0x30] sm:$0xff]  ;;  %v1241_v4 = vld [vmem:[%s1424_s2 + $0x8] sm:$0xff]  ;;  %v1253_v6 = vld [vmem:[%s1424_s2 + $0x18] sm:$0xff]  ;;  %v1183_v23 = vmov 2  }
  0x14   :  { %156 = vperm.xlu0 %1090, %v1224_v1   ;;  %148 = vperm.xlu1 %1088, %v1229_v2   ;;  %v1248_v5 = vld [vmem:[%s1424_s2 + $0x50] sm:$0xff]  ;;  %v1263_v8 = vld [vmem:[%s1424_s2 + $0x20] sm:$0xff]  ;;  %v1271_v9 = vld [vmem:[%s1424_s2 + $0x28] sm:$0xff] }
  0x15   :  { %v1281_v10 = vld [vmem:[%s1424_s2 + $0x48] sm:$0xff]  ;;  %v1286_v11 = vld [vmem:[%s1424_s2 + $0x38] sm:$0xff]  ;;  %v1301_v13 = vld [vmem:[%s1424_s2 + $0x40] sm:$0xff] }
  0x16   :  { %v1296_v12 = vld [vmem:[%s1424_s2 + $0x68] sm:$0xff]  ;;  %v1307_v14 = vld [vmem:[%s1424_s2 + $0x70] sm:$0xff]  ;;  %v1319_v15 = vld [vmem:[%s1424_s2 + $0x58] sm:$0xff] }
  0x17   :  { %v1327_v16 = vld [vmem:[%s1424_s2 + $0x60] sm:$0xff]  ;;  %v1336_v17 = vld [vmem:[%s1424_s2 + $0x78] sm:$0xff] }
  0x18   :  { %172 = vperm.xlu0 %1090, %v1236_v3   ;;  %152 = vperm.xlu1 %1088, %v1241_v4   ;;  %v243_v18 = vld [vmem:[#allocation2] sm:$0xff] }
  0x19   :  { %935 = vmatprep.mubr.f32.mxu0 %v243_v18  ;;  %v1350_v26 = vld [vmem:[%s1422_s0] ss:$0 sm:$0xff] }
  0x1c   :  { %188 = vperm.xlu0 %1090, %v1248_v5   ;;  %1089 = vset.pattern.permute.xlu1 %v1182_v7 }
  0x1d   :  { %62 = vperm.xlu1 %1089, %v1253_v6  }
  0x20   :  { %1099 = vset.pattern.permute.xlu0 %v1182_v7 }
  0x21   :  { %47 = vperm.xlu0 %1099, %v1229_v2   ;;  %1091 = vset.pattern.permute.xlu1 %v1181_v0 }
  0x22   :  { %160 = vperm.xlu1 %1091, %v1253_v6  }
  0x25   :  { %52 = vperm.xlu0 %1099, %v1241_v4  }
  0x26   :  { %1092 = vset.pattern.permute.xlu1 %v1182_v7 }
  0x27   :  { %67 = vperm.xlu1 %1092, %v1263_v8  }
  0x29   :  { %57 = vperm.xlu0 %1099, %v1224_v1  }
  0x2b   :  { %1093 = vset.pattern.permute.xlu1 %v1181_v0 }
  0x2c   :  { %164 = vperm.xlu1 %1093, %v1263_v8  }
  0x2d   :  { %72 = vperm.xlu0 %1099, %v1271_v9  }
  0x30   :  { %168 = vperm.xlu1 %1093, %v1271_v9  }
  0x31   :  { %77 = vperm.xlu0 %1099, %v1236_v3  }
  0x34   :  { %1094 = vset.pattern.permute.xlu1 %v1182_v7 }
  0x35   :  { %92 = vperm.xlu0 %1099, %v1281_v10   ;;  %82 = vperm.xlu1 %1094, %v1286_v11  }
  0x39   :  { %97 = vperm.xlu0 %1099, %v1248_v5   ;;  %1095 = vset.pattern.permute.xlu1 %v1181_v0 }
  0x3a   :  { %176 = vperm.xlu1 %1095, %v1286_v11  }
  0x3d   :  { %112 = vperm.xlu0 %1099, %v1296_v12  }
  0x3e   :  { %1096 = vset.pattern.permute.xlu1 %v1182_v7 }
  0x3f   :  { %87 = vperm.xlu1 %1096, %v1301_v13  }
  0x41   :  { %117 = vperm.xlu0 %1099, %v1307_v14  }
  0x43   :  { %1097 = vset.pattern.permute.xlu1 %v1181_v0 }
  0x44   :  { %180 = vperm.xlu1 %1097, %v1301_v13  }
  0x45   :  { %1104 = vset.pattern.permute.xlu0 %v1181_v0 }
  0x46   :  { %204 = vperm.xlu0 %1104, %v1307_v14  }
  0x48   :  { %184 = vperm.xlu1 %1097, %v1281_v10  }
  0x4a   :  { %1107 = vset.pattern.permute.xlu0 %v1183_v23 }
  0x4b   :  { %264 = vperm.xlu0 %1107, %v1241_v4  }
  0x4c   :  { %1098 = vset.pattern.permute.xlu1 %v1182_v7 }
  0x4d   :  { %102 = vperm.xlu1 %1098, %v1319_v15  }
  0x4f   :  { %276 = vperm.xlu0 %1107, %v1263_v8  }
  0x51   :  { %1100 = vset.pattern.permute.xlu1 %v1181_v0 }
  0x52   :  { %192 = vperm.xlu1 %1100, %v1319_v15  }
  0x53   :  { %284 = vperm.xlu0 %1107, %v1236_v3  }
  0x56   :  { %1101 = vset.pattern.permute.xlu1 %v1182_v7 }
  0x57   :  { %107 = vperm.xlu1 %1101, %v1327_v16   ;;  %292 = vperm.xlu0 %1107, %v1301_v13  }
  0x5b   :  { %1102 = vset.pattern.permute.xlu1 %v1181_v0  ;;  %300 = vperm.xlu0 %1107, %v1248_v5  }
  0x5c   :  { %196 = vperm.xlu1 %1102, %v1327_v16  }
  0x5f   :  { %308 = vperm.xlu0 %1107, %v1327_v16  }
  0x60   :  { %200 = vperm.xlu1 %1102, %v1296_v12  }
  0x63   :  { %316 = vperm.xlu0 %1107, %v1307_v14  }
  0x64   :  { %1103 = vset.pattern.permute.xlu1 %v1182_v7 }
  0x65   :  { %122 = vperm.xlu1 %1103, %v1336_v17  }
  0x69   :  { %1105 = vset.pattern.permute.xlu1 %v1181_v0 }
  0x6a   :  { %208 = vperm.xlu1 %1105, %v1336_v17  }
  0x6e   :  { %1106 = vset.pattern.permute.xlu1 %v1183_v23 }
  0x6f   :  { %260 = vperm.xlu1 %1106, %v1229_v2  }
  0x73   :  { %268 = vperm.xlu1 %1106, %v1224_v1  }
  0x77   :  { %272 = vperm.xlu1 %1106, %v1253_v6  }
  0x7b   :  { %280 = vperm.xlu1 %1106, %v1271_v9  }
  0x7f   :  { %288 = vperm.xlu1 %1106, %v1286_v11  }
  0x83   :  { %296 = vperm.xlu1 %1106, %v1281_v10  }
  0x87   :  { %304 = vperm.xlu1 %1106, %v1319_v15  }
  0x8b   :  { %312 = vperm.xlu1 %1106, %v1296_v12  }
  0x8f   :  { %320 = vperm.xlu1 %1106, %v1336_v17  }
  0x93   :  { %v149_v19 = vpop.permute.xlu1 %148  ;;  %v157_v20 = vpop.permute.xlu0 %156 }
  0x97   :  { %v153_v21 = vpop.permute.xlu1 %152  ;;  %v173_v22 = vpop.permute.xlu0 %172 }
  0x9b   :  { %v1341_v24 = vpop.permute.xlu0 %188 }
  0x9c   :  { %v63_v25 = vpop.permute.xlu1 %62 }
  0x9d   :  { %v134_v33 = vmul.f32 %v1350_v26, %v63_v25 }
  0xa0   :  { %v48_v27 = vpop.permute.xlu0 %47 }
  0xa1   :  { %v131_v28 = vmul.f32 %v1350_v26, %v48_v27  ;;  %v161_v29 = vpop.permute.xlu1 %160 }
  0xa2   :  { %v214_v36 = vadd.f32 %v161_v29, %v134_v33 }
  0xa3   :  { %v211_v30 = vadd.f32 %v149_v19, %v131_v28 }
  0xa4   :  { %v53_v31 = vpop.permute.xlu0 %52 }
  0xa5   :  { %v132_v32 = vmul.f32 %v1350_v26, %v53_v31  ;;  %1122 = vtanh.f32 %v211_v30 }
  0xa6   :  { %v68_v34 = vpop.permute.xlu1 %67 }
  0xa7   :  { %v212_v35 = vadd.f32 %v153_v21, %v132_v32  ;;  %v135_v39 = vmul.f32 %v1350_v26, %v68_v34 }
  0xa8   :  { %v58_v37 = vpop.permute.xlu0 %57 }
  0xa9   :  { %1124 = vtanh.f32 %v212_v35  ;;  %v133_v38 = vmul.f32 %v1350_v26, %v58_v37 }
  0xaa   :  { %1126 = vtanh.f32 %v214_v36 }
  0xab   :  { %v213_v40 = vadd.f32 %v157_v20, %v133_v38  ;;  %v165_v41 = vpop.permute.xlu1 %164 }
  0xac   :  { %v73_v42 = vpop.permute.xlu0 %72  ;;  %v215_v43 = vadd.f32 %v165_v41, %v135_v39 }
  0xad   :  { %1128 = vtanh.f32 %v213_v40  ;;  %v136_v44 = vmul.f32 %v1350_v26, %v73_v42 }
  0xae   :  { %1130 = vtanh.f32 %v215_v43 }
  0xaf   :  { %v169_v45 = vpop.permute.xlu1 %168  ;;  %v1123_v47 = vpop.eup %1122 }
  0xb0   :  { %v216_v46 = vadd.f32 %v169_v45, %v136_v44  ;;  %v78_v48 = vpop.permute.xlu0 %77 }
  0xb1   :  { %v137_v50 = vmul.f32 %v1350_v26, %v78_v48 }
  0xb2   :  { %1132 = vtanh.f32 %v216_v46 }
  0xb3   :  { %v1125_v49 = vpop.eup %1124  ;;  %v217_v55 = vadd.f32 %v173_v22, %v137_v50 }
  0xb4   :  { %v83_v51 = vpop.permute.xlu1 %82  ;;  %v1015_v52 = vpack.c.bf16 %v1125_v49, %v1123_v47  ;;  %v1127_v53 = vpop.eup %1126 }
  0xb5   :  { %v138_v56 = vmul.f32 %v1350_v26, %v83_v51  ;;  %1134 = vtanh.f32 %v217_v55  ;;  %v93_v0 = vpop.permute.xlu0 %92 }
  0xb6   :  { %1016 = vmatprep.subr.bf16.mxu0 %v1015_v52  ;;  %v140_v19 = vmul.f32 %v1350_v26, %v93_v0  ;;  %v246_v0 = vld [vmem:[#allocation2 + $0x18] sm:$0xff] }
  0xb7   :  { %v1129_v54 = vpop.eup %1128  ;;  %1018 = vmatpush3.bf16.msra.mxu0 %v1015_v52 }
  0xb8   :  { %v1019_v57 = vpack.c.bf16 %v1127_v53, %v1129_v54  ;;  %v1131_v60 = vpop.eup %1130 }
  0xb9   :  { %v177_v58 = vpop.permute.xlu1 %176  ;;  %v98_v27 = vpop.permute.xlu0 %97 }
  0xba   :  { %v218_v59 = vadd.f32 %v177_v58, %v138_v56  ;;  %1020 = vmatprep.subr.bf16.mxu0 %v1019_v57  ;;  %v141_v29 = vmul.f32 %v1350_v26, %v98_v27  ;;  %v256_v27 = vld [vmem:[#allocation2 + $0x68] sm:$0xff] }
  0xbb   :  { %1022 = vmatpush3.bf16.msra.mxu0 %v1019_v57 }
  0xbc   :  { %v1133_v61 = vpop.eup %1132  ;;  %1136 = vtanh.f32 %v218_v59  ;;  %v221_v31 = vadd.f32 %v1341_v24, %v141_v29  ;;  %v258_v29 = vld [vmem:[#allocation2 + $0x78] sm:$0xff] }
  0xbd   :  { %v1023_v62 = vpack.c.bf16 %v1133_v61, %v1131_v60  ;;  %v113_v39 = vpop.permute.xlu0 %112 }
  0xbe   :  { %v88_v63 = vpop.permute.xlu1 %87  ;;  %v144_v24 = vmul.f32 %v1350_v26, %v113_v39 }
  0xbf   :  { %1024 = vmatprep.subr.bf16.mxu0 %v1023_v62  ;;  %v139_v7 = vmul.f32 %v1350_v26, %v88_v63  ;;  %v1135_v20 = vpop.eup %1134  ;;  %v245_v63 = vld [vmem:[#allocation2 + $0x10] sm:$0xff] }
  0xc0   :  { %1026 = vmatpush3.bf16.msra.mxu0 %v1023_v62  ;;  %v244_v62 = vld [vmem:[#allocation2 + $0x8] sm:$0xff] }
  0xc1   :  { %v118_v45 = vpop.permute.xlu0 %117 }
  0xc2   :  { %v145_v49 = vmul.f32 %v1350_v26, %v118_v45 }
  0xc3   :  { %v181_v18 = vpop.permute.xlu1 %180 }
  0xc4   :  { %v219_v21 = vadd.f32 %v181_v18, %v139_v7  ;;  %v248_v7 = vld [vmem:[#allocation2 + $0x28] sm:$0xff]  ;;  %v249_v18 = vld [vmem:[#allocation2 + $0x30] sm:$0xff] }
  0xc5   :  { %v205_v50 = vpop.permute.xlu0 %204 }
  0xc6   :  { %v1137_v22 = vpop.eup %1136  ;;  %1138 = vtanh.f32 %v219_v21  ;;  %v225_v52 = vadd.f32 %v205_v50, %v145_v49  ;;  %v252_v21 = vld [vmem:[#allocation2 + $0x48] sm:$0xff] }
  0xc7   :  { %v185_v23 = vpop.permute.xlu1 %184  ;;  %v1027_v25 = vpack.c.bf16 %v1137_v22, %v1135_v20  ;;  %v251_v20 = vld [vmem:[#allocation2 + $0x40] sm:$0xff]  ;;  %v253_v22 = vld [vmem:[#allocation2 + $0x50] sm:$0xff] }
  0xc8   :  { %v220_v28 = vadd.f32 %v185_v23, %v140_v19  ;;  %v250_v19 = vld [vmem:[#allocation2 + $0x38] sm:$0xff] }
  0xc9   :  { %1028 = vmatprep.subr.bf16.mxu0 %v1027_v25  ;;  %v254_v23 = vld [vmem:[#allocation2 + $0x58] sm:$0xff] }
  0xca   :  { %1140 = vtanh.f32 %v220_v28  ;;  %1030 = vmatpush3.bf16.msra.mxu0 %v1027_v25  ;;  %v255_v25 = vld [vmem:[#allocation2 + $0x60] sm:$0xff]  ;;  %v257_v28 = vld [vmem:[#allocation2 + $0x70] sm:$0xff] }
  0xcb   :  { %1142 = vtanh.f32 %v221_v31  ;;  %v1184_v31 = vmov 3  }
  0xcc   :  { %v103_v30 = vpop.permute.xlu1 %102  ;;  %1109 = vset.pattern.permute.xlu1 %v1184_v31  ;;  %1108 = vset.pattern.permute.xlu0 %v1184_v31 }
  0xcd   :  { %v142_v32 = vmul.f32 %v1350_v26, %v103_v30  ;;  %v485_v30 = vld [vmem:[#allocation2 + $0x80] sm:$0xff]  ;;  %506 = vperm.xlu1 %1109, %v1241_v4   ;;  %502 = vperm.xlu0 %1108, %v1229_v2  }
  0xce   :  { %991 = vmatprep.mubr.f32.mxu1 %v485_v30 }
  0xd0   :  { %v1139_v35 = vpop.eup %1138 }
  0xd1   :  { %v193_v33 = vpop.permute.xlu1 %192  ;;  %510 = vperm.xlu1 %1109, %v1224_v1   ;;  %514 = vperm.xlu0 %1108, %v1253_v6  }
  0xd2   :  { %v222_v34 = vadd.f32 %v193_v33, %v142_v32  ;;  %v1185_v32 = vmov 4  }
  0xd4   :  { %v1141_v36 = vpop.eup %1140  ;;  %1144 = vtanh.f32 %v222_v34 }
  0xd5   :  { %v1031_v37 = vpack.c.bf16 %v1141_v36, %v1139_v35  ;;  %v1143_v42 = vpop.eup %1142  ;;  %518 = vperm.xlu1 %1109, %v1263_v8   ;;  %522 = vperm.xlu0 %1108, %v1271_v9  }
  0xd6   :  { %v108_v38 = vpop.permute.xlu1 %107 }
  0xd7   :  { %1032 = vmatprep.subr.bf16.mxu0 %v1031_v37  ;;  %v143_v40 = vmul.f32 %v1350_v26, %v108_v38 }
  0xd8   :  { %1034 = vmatpush3.bf16.msra.mxu0 %v1031_v37 }
  0xd9   :  { %1110 = vset.pattern.permute.xlu1 %v1185_v32  ;;  %526 = vperm.xlu0 %1108, %v1236_v3  }
  0xda   :  { %727 = vperm.xlu1 %1110, %v1229_v2  }
  0xdb   :  { %v197_v41 = vpop.permute.xlu1 %196 }
  0xdc   :  { %v223_v43 = vadd.f32 %v197_v41, %v143_v40 }
  0xdd   :  { %1111 = vset.pattern.permute.xlu0 %v1185_v32 }
  0xde   :  { %v1145_v44 = vpop.eup %1144  ;;  %1146 = vtanh.f32 %v223_v43  ;;  %735 = vperm.xlu1 %1110, %v1224_v1   ;;  %731 = vperm.xlu0 %1111, %v1241_v4   ;;  %v1186_v4 = vmov 5  }
  0xdf   :  { %v201_v46 = vpop.permute.xlu1 %200  ;;  %v1035_v47 = vpack.c.bf16 %v1145_v44, %v1143_v42 }
  0xe0   :  { %v224_v48 = vadd.f32 %v201_v46, %v144_v24 }
  0xe1   :  { %1036 = vmatprep.subr.bf16.mxu0 %v1035_v47 }
  0xe2   :  { %1148 = vtanh.f32 %v224_v48  ;;  %1038 = vmatpush3.bf16.msra.mxu0 %v1035_v47  ;;  %739 = vperm.xlu1 %1110, %v1253_v6  }
  0xe3   :  { %1150 = vtanh.f32 %v225_v52  ;;  %747 = vperm.xlu0 %1111, %v1271_v9  }
  0xe4   :  { %v123_v51 = vpop.permute.xlu1 %122 }
  0xe5   :  { %v146_v53 = vmul.f32 %v1350_v26, %v123_v51  ;;  %v247_v26 = vld [vmem:[#allocation2 + $0x20] sm:$0xff] }
  0xe6   :  { %743 = vperm.xlu1 %1110, %v1263_v8   ;;  %v265_v8 = vpop.permute.xlu0 %264 }
  0xe7   :  { %759 = vperm.xlu0 %1111, %v1301_v13  }
  0xe8   :  { %v1147_v56 = vpop.eup %1146 }
  0xe9   :  { %v209_v54 = vpop.permute.xlu1 %208 }
  0xea   :  { %v226_v55 = vadd.f32 %v209_v54, %v146_v53  ;;  %1112 = vset.pattern.permute.xlu1 %v1184_v31 }
  0xeb   :  { %771 = vperm.xlu0 %1111, %v1319_v15   ;;  %530 = vperm.xlu1 %1112, %v1286_v11  }
  0xec   :  { %v1149_v57 = vpop.eup %1148  ;;  %1152 = vtanh.f32 %v226_v55 }
  0xed   :  { %v1039_v58 = vpack.c.bf16 %v1149_v57, %v1147_v56  ;;  %v1151_v59 = vpop.eup %1150 }
  0xee   :  { %v261_v1 = vpop.permute.xlu1 %260 }
  0xef   :  { %1040 = vmatprep.subr.bf16.mxu0 %v1039_v58  ;;  %1117 = vset.pattern.permute.xlu0 %v1184_v31 }
  0xf0   :  { %1042 = vmatpush3.bf16.msra.mxu0 %v1039_v58  ;;  %534 = vperm.xlu1 %1112, %v1301_v13  }
  0xf1   :  { %538 = vperm.xlu0 %1117, %v1281_v10  }
  0xf2   :  { %v269_v6 = vpop.permute.xlu1 %268 }
  0xf4   :  { %1113 = vset.pattern.permute.xlu1 %v1185_v32 }
  0xf5   :  { %550 = vperm.xlu0 %1117, %v1327_v16   ;;  %751 = vperm.xlu1 %1113, %v1236_v3  }
  0xf6   :  { %v1153_v60 = vpop.eup %1152  ;;  %v273_v3 = vpop.permute.xlu1 %272 }
  0xf7   :  { %v1043_v61 = vpack.c.bf16 %v1153_v60, %v1151_v59 }
  0xf9   :  { %1044 = vmatprep.subr.bf16.mxu0 %v1043_v61  ;;  %562 = vperm.xlu0 %1117, %v1336_v17  }
  0xfa   :  { %1046 = vmatpush3.bf16.msra.mxu0 %v1043_v61  ;;  %755 = vperm.xlu1 %1113, %v1286_v11   ;;  %v281_v9 = vpop.permute.xlu1 %280  ;;  %v277_v11 = vpop.permute.xlu0 %276 }
  0xfd   :  { %936 = vmatmul.mubr.f32.vlgmr.msra.gmra.mrb[0].mxu0 %v244_v62  ;;  %1119 = vset.pattern.permute.xlu0 %v1185_v32 }
  0xfe   :  { %938 = vmatprep.mubr.f32.mxu0 %v245_v63  ;;  %1114 = vset.pattern.permute.xlu1 %v1184_v31  ;;  %v289_v36 = vpop.permute.xlu1 %288 }
  0xff   :  { %787 = vperm.xlu0 %1119, %v1336_v17   ;;  %542 = vperm.xlu1 %1114, %v1248_v5  }
 0x101   :  { %939 = vmatmul.mubr.f32.gmra.mrb[2].mxu0 %v246_v0 }
 0x102   :  { %941 = vmatprep.mubr.f32.mxu0 %v247_v26  ;;  %v297_v45 = vpop.permute.xlu1 %296 }
 0x103   :  { %1121 = vset.pattern.permute.xlu0 %v1186_v4  ;;  %546 = vperm.xlu1 %1114, %v1319_v15  }
 0x105   :  { %942 = vmatmul.mubr.f32.gmra.mrb[4].mxu0 %v248_v7 }
 0x106   :  { %944 = vmatprep.mubr.f32.mxu0 %v249_v18  ;;  %v305_v57 = vpop.permute.xlu1 %304 }
 0x107   :  { %1115 = vset.pattern.permute.xlu1 %v1185_v32 }
 0x108   :  { %763 = vperm.xlu1 %1115, %v1281_v10   ;;  %v285_v10 = vpop.permute.xlu0 %284 }
 0x109   :  { %945 = vmatmul.mubr.f32.gmra.mrb[6].mxu0 %v250_v19 }
 0x10a   :  { %947 = vmatprep.mubr.f32.mxu0 %v251_v20  ;;  %v313_v19 = vpop.permute.xlu1 %312 }
 0x10c   :  { %767 = vperm.xlu1 %1115, %v1248_v5   ;;  %v293_v48 = vpop.permute.xlu0 %292 }
 0x10d   :  { %948 = vmatmul.mubr.f32.gmra.mrb[8].mxu0 %v252_v21 }
 0x10e   :  { %950 = vmatprep.mubr.f32.mxu0 %v253_v22 }
 0x110   :  { %1116 = vset.pattern.permute.xlu1 %v1184_v31 }
 0x111   :  { %951 = vmatmul.mubr.f32.gmra.mrb[10].mxu0 %v254_v23  ;;  %554 = vperm.xlu1 %1116, %v1296_v12  }
 0x112   :  { %953 = vmatprep.mubr.f32.mxu0 %v255_v25 }
 0x115   :  { %954 = vmatmul.mubr.f32.gmra.mrb[12].mxu0 %v256_v27  ;;  %558 = vperm.xlu1 %1116, %v1307_v14  }
 0x116   :  { %956 = vmatprep.mubr.f32.mxu0 %v257_v28 }
 0x119   :  { %957 = vmatmul.mubr.f32.gmra.mrb[14].mxu0 %v258_v29  ;;  %1118 = vset.pattern.permute.xlu1 %v1185_v32  ;;  %v321_v32 = vpop.permute.xlu1 %320 }
 0x11a   :  { %775 = vperm.xlu1 %1118, %v1327_v16   ;;  %v301_v16 = vpop.permute.xlu0 %300 }
 0x11e   :  { %779 = vperm.xlu1 %1118, %v1296_v12   ;;  %v309_v22 = vpop.permute.xlu0 %308 }
 0x122   :  { %783 = vperm.xlu1 %1118, %v1307_v14  }
 0x126   :  { %1120 = vset.pattern.permute.xlu1 %v1186_v4  ;;  %v317_v4 = vpop.permute.xlu0 %316 }
 0x127   :  { %828 = vperm.xlu1 %1120, %v1229_v2  }
 0x1d0   :  { %v937_v13 = vpop.f32.mrb[0].mxu0 }
 0x1d1   :  { %v395_v17 = vadd.f32 %v937_v13, %v265_v8  ;;  %v389_v33 = vpop.f32.mrb[1].mxu0 }
 0x1d2   :  { %v390_v34 = vadd.f32 %v389_v33, %v261_v1  ;;  %v486_v33 = vld [vmem:[#allocation2 + $0x88] sm:$0xff] }
 0x1d3   :  { %v469_v35 = vmax.f32 %v395_v17, 0.0 }
 0x1d4   :  { %v468_v37 = vmax.f32 %v390_v34, 0.0  ;;  %v940_v15 = vpop.f32.mrb[2].mxu0  ;;  %v487_v34 = vld [vmem:[#allocation2 + $0x90] sm:$0xff] }
 0x1d5   :  { %v405_v38 = vadd.f32 %v940_v15, %v273_v3  ;;  %v399_v39 = vpop.f32.mrb[3].mxu0  ;;  %v491_v15 = vld [vmem:[#allocation2 + $0xb0] sm:$0xff] }
 0x1d6   :  { %v400_v40 = vadd.f32 %v399_v39, %v269_v6  ;;  %v1047_v5 = vpack.c.bf16 %v469_v35, %v468_v37  ;;  %v488_v35 = vld [vmem:[#allocation2 + $0x98] sm:$0xff]  ;;  %v490_v37 = vld [vmem:[#allocation2 + $0xa8] sm:$0xff] }
 0x1d7   :  { %v471_v41 = vmax.f32 %v405_v38, 0.0  ;;  %v493_v38 = vld [vmem:[#allocation2 + $0xc0] sm:$0xff]  ;;  %v494_v39 = vld [vmem:[#allocation2 + $0xc8] sm:$0xff] }
 0x1d8   :  { %v470_v42 = vmax.f32 %v400_v40, 0.0  ;;  %v943_v43 = vpop.f32.mrb[4].mxu0  ;;  %1048 = vmatprep.subr.bf16.mxu1 %v1047_v5  ;;  %v495_v40 = vld [vmem:[#allocation2 + $0xd0] sm:$0xff] }
 0x1d9   :  { %v415_v44 = vadd.f32 %v943_v43, %v281_v9  ;;  %v409_v24 = vpop.f32.mrb[5].mxu0  ;;  %1050 = vmatpush3.bf16.msra.mxu1 %v1047_v5  ;;  %v496_v5 = vld [vmem:[#allocation2 + $0xd8] sm:$0xff]  ;;  %v499_v43 = vld [vmem:[#allocation2 + $0xf0] sm:$0xff] }
 0x1da   :  { %v1051_v46 = vpack.c.bf16 %v471_v41, %v470_v42  ;;  %v410_v47 = vadd.f32 %v409_v24, %v277_v11  ;;  %v497_v41 = vld [vmem:[#allocation2 + $0xe0] sm:$0xff]  ;;  %v498_v42 = vld [vmem:[#allocation2 + $0xe8] sm:$0xff]  ;;  %v507_v24 = vpop.permute.xlu1 %506 }
 0x1db   :  { %v473_v49 = vmax.f32 %v415_v44, 0.0  ;;  %v500_v44 = vld [vmem:[#allocation2 + $0xf8] sm:$0xff] }
 0x1dc   :  { %v472_v50 = vmax.f32 %v410_v47, 0.0  ;;  %v946_v51 = vpop.f32.mrb[6].mxu0  ;;  %1052 = vmatprep.subr.bf16.mxu1 %v1051_v46 }
 0x1dd   :  { %v425_v52 = vadd.f32 %v946_v51, %v289_v36  ;;  %v419_v53 = vpop.f32.mrb[7].mxu0  ;;  %1054 = vmatpush3.bf16.msra.mxu1 %v1051_v46  ;;  %v489_v36 = vld [vmem:[#allocation2 + $0xa0] sm:$0xff] }
 0x1de   :  { %v1055_v54 = vpack.c.bf16 %v473_v49, %v472_v50  ;;  %v420_v55 = vadd.f32 %v419_v53, %v285_v10  ;;  %v492_v10 = vld [vmem:[#allocation2 + $0xb8] sm:$0xff]  ;;  %v503_v53 = vpop.permute.xlu0 %502 }
 0x1df   :  { %v475_v56 = vmax.f32 %v425_v52, 0.0 }
 0x1e0   :  { %v474_v58 = vmax.f32 %v420_v55, 0.0  ;;  %v949_v59 = vpop.f32.mrb[8].mxu0  ;;  %1056 = vmatprep.subr.bf16.mxu1 %v1055_v54 }
 0x1e1   :  { %v435_v60 = vadd.f32 %v949_v59, %v297_v45  ;;  %v429_v61 = vpop.f32.mrb[9].mxu0  ;;  %1058 = vmatpush3.bf16.msra.mxu1 %v1055_v54  ;;  %v511_v45 = vpop.permute.xlu1 %510 }
 0x1e2   :  { %v1059_v62 = vpack.c.bf16 %v475_v56, %v474_v58  ;;  %v430_v63 = vadd.f32 %v429_v61, %v293_v48  ;;  %v515_v55 = vpop.permute.xlu0 %514 }
 0x1e3   :  { %v477_v0 = vmax.f32 %v435_v60, 0.0 }
 0x1e4   :  { %v476_v26 = vmax.f32 %v430_v63, 0.0  ;;  %v952_v7 = vpop.f32.mrb[10].mxu0  ;;  %1060 = vmatprep.subr.bf16.mxu1 %v1059_v62 }
 0x1e5   :  { %v445_v12 = vadd.f32 %v952_v7, %v305_v57  ;;  %v439_v18 = vpop.f32.mrb[11].mxu0  ;;  %1062 = vmatpush3.bf16.msra.mxu1 %v1059_v62  ;;  %v519_v46 = vpop.permute.xlu1 %518 }
 0x1e6   :  { %v1063_v20 = vpack.c.bf16 %v477_v0, %v476_v26  ;;  %v440_v21 = vadd.f32 %v439_v18, %v301_v16  ;;  %v523_v57 = vpop.permute.xlu0 %522 }
 0x1e7   :  { %v479_v23 = vmax.f32 %v445_v12, 0.0 }
 0x1e8   :  { %v478_v25 = vmax.f32 %v440_v21, 0.0  ;;  %v955_v14 = vpop.f32.mrb[12].mxu0  ;;  %1064 = vmatprep.subr.bf16.mxu1 %v1063_v20 }
 0x1e9   :  { %v455_v27 = vadd.f32 %v955_v14, %v313_v19  ;;  %v449_v28 = vpop.f32.mrb[13].mxu0  ;;  %1066 = vmatpush3.bf16.msra.mxu1 %v1063_v20  ;;  %v728_v47 = vpop.permute.xlu1 %727 }
 0x1ea   :  { %v1067_v29 = vpack.c.bf16 %v479_v23, %v478_v25  ;;  %v450_v30 = vadd.f32 %v449_v28, %v309_v22  ;;  %v527_v59 = vpop.permute.xlu0 %526 }
 0x1eb   :  { %v481_v31 = vmax.f32 %v455_v27, 0.0 }
 0x1ec   :  { %v480_v1 = vmax.f32 %v450_v30, 0.0  ;;  %v958_v6 = vpop.f32.mrb[14].mxu0  ;;  %1068 = vmatprep.subr.bf16.mxu1 %v1067_v29 }
 0x1ed   :  { %v465_v3 = vadd.f32 %v958_v6, %v321_v32  ;;  %v459_v8 = vpop.f32.mrb[15].mxu0  ;;  %1070 = vmatpush3.bf16.msra.mxu1 %v1067_v29  ;;  %v736_v48 = vpop.permute.xlu1 %735 }
 0x1ee   :  { %v1071_v2 = vpack.c.bf16 %v481_v31, %v480_v1  ;;  %v460_v9 = vadd.f32 %v459_v8, %v317_v4  ;;  %v732_v60 = vpop.permute.xlu0 %731 }
 0x1ef   :  { %v483_v11 = vmax.f32 %v465_v3, 0.0 }
 0x1f0   :  { %v482_v13 = vmax.f32 %v460_v9, 0.0  ;;  %1072 = vmatprep.subr.bf16.mxu1 %v1071_v2 }
 0x1f1   :  { %1074 = vmatpush3.bf16.msra.mxu1 %v1071_v2  ;;  %v740_v49 = vpop.permute.xlu1 %739 }
 0x1f2   :  { %v1075_v17 = vpack.c.bf16 %v483_v11, %v482_v13  ;;  %v748_v62 = vpop.permute.xlu0 %747 }
 0x1f4   :  { %1076 = vmatprep.subr.bf16.mxu1 %v1075_v17 }
 0x1f5   :  { %1078 = vmatpush3.bf16.msra.mxu1 %v1075_v17  ;;  %v744_v50 = vpop.permute.xlu1 %743 }
 0x1f6   :  { %v760_v25 = vpop.permute.xlu0 %759 }
 0x1f8   :  { %992 = vmatmul.mubr.f32.vlgmr.msra.gmra.mrb[0].mxu1 %v486_v33 }
 0x1f9   :  { %994 = vmatprep.mubr.f32.mxu1 %v487_v34  ;;  %v531_v51 = vpop.permute.xlu1 %530 }
 0x1fa   :  { %v772_v8 = vpop.permute.xlu0 %771 }
 0x1fc   :  { %995 = vmatmul.mubr.f32.gmra.mrb[2].mxu1 %v488_v35 }
 0x1fd   :  { %997 = vmatprep.mubr.f32.mxu1 %v489_v36  ;;  %v535_v52 = vpop.permute.xlu1 %534 }
 0x200   :  { %998 = vmatmul.mubr.f32.gmra.mrb[4].mxu1 %v490_v37 }
 0x201   :  { %1000 = vmatprep.mubr.f32.mxu1 %v491_v15  ;;  %v752_v54 = vpop.permute.xlu1 %751 }
 0x204   :  { %1001 = vmatmul.mubr.f32.gmra.mrb[6].mxu1 %v492_v10 }
 0x205   :  { %1003 = vmatprep.mubr.f32.mxu1 %v493_v38  ;;  %v756_v56 = vpop.permute.xlu1 %755 }
 0x208   :  { %1004 = vmatmul.mubr.f32.gmra.mrb[8].mxu1 %v494_v39  ;;  %v539_v39 = vpop.permute.xlu0 %538 }
 0x209   :  { %1006 = vmatprep.mubr.f32.mxu1 %v495_v40  ;;  %v1416_v58 = vpop.permute.xlu1 %542 }
 0x20c   :  { %1007 = vmatmul.mubr.f32.gmra.mrb[10].mxu1 %v496_v5 }
 0x20d   :  { %1009 = vmatprep.mubr.f32.mxu1 %v497_v41  ;;  %v547_v16 = vpop.permute.xlu1 %546 }
 0x210   :  { %1010 = vmatmul.mubr.f32.gmra.mrb[12].mxu1 %v498_v42 }
 0x211   :  { %1012 = vmatprep.mubr.f32.mxu1 %v499_v43  ;;  %v764_v61 = vpop.permute.xlu1 %763 }
 0x214   :  { %1013 = vmatmul.mubr.f32.gmra.mrb[14].mxu1 %v500_v44 }
 0x215   :  { %v768_v18 = vpop.permute.xlu1 %767 }
 0x219   :  { %v555_v1 = vpop.permute.xlu1 %554 }
 0x21d   :  { %v559_v15 = vpop.permute.xlu1 %558 }
 0x2cb   :  { %v993_v63 = vpop.f32.mrb[0].mxu1 }
 0x2cc   :  { %v637_v0 = vadd.f32 %v993_v63, %v507_v24  ;;  %v631_v26 = vpop.f32.mrb[1].mxu1 }
 0x2cd   :  { %v632_v7 = vadd.f32 %v631_v26, %v503_v53 }
 0x2ce   :  { %v711_v12 = vmax.f32 %v637_v0, 0.0 }
 0x2cf   :  { %v710_v19 = vmax.f32 %v632_v7, 0.0  ;;  %v996_v20 = vpop.f32.mrb[2].mxu1 }
 0x2d0   :  { %v791_v21 = vmul.f32 %v732_v60, %v711_v12  ;;  %v647_v22 = vadd.f32 %v996_v20, %v515_v55  ;;  %v641_v23 = vpop.f32.mrb[3].mxu1 }
 0x2d1   :  { %v790_v14 = vmul.f32 %v728_v47, %v710_v19  ;;  %v642_v27 = vadd.f32 %v641_v23, %v511_v45 }
 0x2d2   :  { %v713_v29 = vmax.f32 %v647_v22, 0.0 }
 0x2d3   :  { %v806_v28 = vadd.f32 %v791_v21, %v790_v14  ;;  %v712_v30 = vmax.f32 %v642_v27, 0.0  ;;  %v999_v31 = vpop.f32.mrb[4].mxu1 }
 0x2d4   :  { %v657_v32 = vadd.f32 %v999_v31, %v523_v57  ;;  %v651_v6 = vpop.f32.mrb[5].mxu1  ;;  %v793_v2 = vmul.f32 %v740_v49, %v713_v29  ;;  %v551_v57 = vpop.permute.xlu0 %550 }
 0x2d5   :  { %v792_v4 = vmul.f32 %v736_v48, %v712_v30  ;;  %v652_v3 = vadd.f32 %v651_v6, %v519_v46 }
 0x2d6   :  { %v715_v11 = vmax.f32 %v657_v32, 0.0 }
 0x2d7   :  { %v807_v9 = vadd.f32 %v806_v28, %v792_v4  ;;  %v714_v13 = vmax.f32 %v652_v3, 0.0  ;;  %v1002_v17 = vpop.f32.mrb[6].mxu1 }
 0x2d8   :  { %v667_v33 = vadd.f32 %v1002_v17, %v531_v51  ;;  %v661_v34 = vpop.f32.mrb[7].mxu1  ;;  %v795_v10 = vmul.f32 %v748_v62, %v715_v11  ;;  %v563_v22 = vpop.permute.xlu0 %562 }
 0x2d9   :  { %v794_v35 = vmul.f32 %v744_v50, %v714_v13  ;;  %v808_v36 = vadd.f32 %v807_v9, %v793_v2  ;;  %v662_v37 = vadd.f32 %v661_v34, %v527_v59  ;;  %v776_v50 = vpop.permute.xlu1 %775 }
 0x2da   :  { %v717_v40 = vmax.f32 %v667_v33, 0.0 }
 0x2db   :  { %v809_v38 = vadd.f32 %v808_v36, %v794_v35  ;;  %v716_v5 = vmax.f32 %v662_v37, 0.0  ;;  %v1005_v41 = vpop.f32.mrb[8].mxu1 }
 0x2dc   :  { %v677_v42 = vadd.f32 %v1005_v41, %v539_v39  ;;  %v671_v43 = vpop.f32.mrb[9].mxu1  ;;  %v797_v46 = vmul.f32 %v756_v56, %v717_v40 }
 0x2dd   :  { %v796_v44 = vmul.f32 %v752_v54, %v716_v5  ;;  %v810_v24 = vadd.f32 %v809_v38, %v795_v10  ;;  %v672_v45 = vadd.f32 %v671_v43, %v535_v52  ;;  %v780_v21 = vpop.permute.xlu1 %779 }
 0x2de   :  { %v719_v48 = vmax.f32 %v677_v42, 0.0 }
 0x2df   :  { %v811_v47 = vadd.f32 %v810_v24, %v796_v44  ;;  %v718_v49 = vmax.f32 %v672_v45, 0.0  ;;  %v1008_v51 = vpop.f32.mrb[10].mxu1 }
 0x2e0   :  { %v687_v53 = vadd.f32 %v1008_v51, %v547_v16  ;;  %v681_v55 = vpop.f32.mrb[11].mxu1  ;;  %v799_v63 = vmul.f32 %v764_v61, %v719_v48 }
 0x2e1   :  { %v798_v59 = vmul.f32 %v760_v25, %v718_v49  ;;  %v812_v60 = vadd.f32 %v811_v47, %v797_v46  ;;  %v682_v62 = vadd.f32 %v681_v55, %v1416_v58  ;;  %v784_v4 = vpop.permute.xlu1 %783 }
 0x2e2   :  { %v721_v26 = vmax.f32 %v687_v53, 0.0 }
 0x2e3   :  { %v813_v0 = vadd.f32 %v812_v60, %v798_v59  ;;  %v720_v7 = vmax.f32 %v682_v62, 0.0  ;;  %v1011_v54 = vpop.f32.mrb[12].mxu1 }
 0x2e4   :  { %v697_v12 = vadd.f32 %v1011_v54, %v555_v1  ;;  %v691_v52 = vpop.f32.mrb[13].mxu1  ;;  %v801_v23 = vmul.f32 %v772_v8, %v721_v26 }
 0x2e5   :  { %v800_v56 = vmul.f32 %v768_v18, %v720_v7  ;;  %v814_v19 = vadd.f32 %v813_v0, %v799_v63  ;;  %v692_v20 = vadd.f32 %v691_v52, %v551_v57  ;;  %v788_v18 = vpop.permute.xlu0 %787  ;;  %v829_v36 = vpop.permute.xlu1 %828 }
 0x2e6   :  { %v723_v14 = vmax.f32 %v697_v12, 0.0 }
 0x2e7   :  { %v815_v16 = vadd.f32 %v814_v19, %v800_v56  ;;  %v722_v27 = vmax.f32 %v692_v20, 0.0  ;;  %v1014_v25 = vpop.f32.mrb[14].mxu1 }
 0x2e8   :  { %v707_v28 = vadd.f32 %v1014_v25, %v563_v22  ;;  %v701_v29 = vpop.f32.mrb[15].mxu1  ;;  %v803_v31 = vmul.f32 %v780_v21, %v723_v14 }
 0x2e9   :  { %v802_v58 = vmul.f32 %v776_v50, %v722_v27  ;;  %v816_v61 = vadd.f32 %v815_v16, %v801_v23  ;;  %v702_v30 = vadd.f32 %v701_v29, %v559_v15 }
 0x2ea   :  { %v725_v6 = vmax.f32 %v707_v28, 0.0 }
 0x2eb   :  { %v817_v32 = vadd.f32 %v816_v61, %v802_v58  ;;  %v724_v1 = vmax.f32 %v702_v30, 0.0 }
 0x2ec   :  { %v805_v9 = vmul.f32 %v788_v18, %v725_v6 }
 0x2ed   :  { %v804_v3 = vmul.f32 %v784_v4, %v724_v1  ;;  %v818_v2 = vadd.f32 %v817_v32, %v803_v31 }
 0x2ef   :  { %v819_v11 = vadd.f32 %v818_v2, %v804_v3 }
 0x2f1   :  { %v820_v8 = vadd.f32 %v819_v11, %v805_v9 }
 0x2f3   :  { %v821_v13 = vrot.slane %v820_v8, 4 }
 0x2f5   :  { %v822_v17 = vadd.f32 %v821_v13, %v820_v8 }
 0x2f7   :  { %v823_v33 = vrot.slane %v822_v17, 2 }
 0x2f9   :  { %v824_v34 = vadd.f32 %v823_v33, %v822_v17 }
 0x2fb   :  { %v825_v35 = vrot.slane %v824_v34, 1 }
 0x2fd   :  { %v826_v37 = vadd.f32 %v825_v35, %v824_v34 }
 0x2ff   :  { %v831_v10 = vadd.f32 %v829_v36, %v826_v37 }
 0x301   :  { %832 = vst [vmem:[%s1425_s3] sm:$0x1] %v831_v10 }
 0x302   :  { %837 = vsyncpa [#allocation3], 1 }

</bundles_post_ra>
